<compile_context>
chip_gen: v7x
topology: tpu7x:2x2x1
jax: 0.10.0
libtpu: 0.0.40
codegen_flags: <defaults>
</compile_context>

<pallas_src>
import functools

import jax
import jax.numpy as jnp
from jax.experimental import pallas as pl
from jax.experimental.pallas import tpu as pltpu


def _round_up(x: int, m: int) -> int:
    return ((x + m - 1) // m) * m


def _make_kl_kernel(temperature, n_rows, tile_rows, needs_row_mask):
    # Python float -> lowered as a literal.  (A jnp scalar here would become a
    # closure-captured constant and fail tracing.)
    inv_t = 1.0 / float(temperature)

    def kernel(s_ref, t_ref, o_ref):
        # (TN, C) tiles, upcast to f32 in VMEM (inputs may be bf16/f16 to halve HBM traffic).
        s = s_ref[...].astype(jnp.float32) * inv_t
        t = t_ref[...].astype(jnp.float32)

        # Numerically stable softmax pieces over the class (lane) axis.
        s_shift = s - jnp.max(s, axis=1, keepdims=True)
        t_shift = t - jnp.max(t, axis=1, keepdims=True)
        s_denom = jnp.sum(jnp.exp(s_shift), axis=1, keepdims=True)
        t_exp = jnp.exp(t_shift)
        t_denom = jnp.sum(t_exp, axis=1, keepdims=True)

        # sum_c p*(log p - log q) = cross / t_denom - log(t_denom) + log(s_denom)
        cross = jnp.sum(t_exp * (t_shift - s_shift), axis=1, keepdims=True)
        kl_row = cross / t_denom - jnp.log(t_denom) + jnp.log(s_denom)  # (TN, 1)

        if needs_row_mask:
            # Ragged last tile: overhang rows hold whatever the DMA left in VMEM, so mask
            # with a select (NOT a multiplicative mask -- garbage may be NaN/Inf).
            i = pl.program_id(0)
            row = jax.lax.broadcasted_iota(jnp.int32, kl_row.shape, 0) + i * tile_rows
            kl_row = jnp.where(row < n_rows, kl_row, 0.0)

        o_ref[...] = kl_row  # per-row partials; reduced (and divided by N) in the wrapper

    return kernel


def _vmem_params():
    """Generation-aware (tile budget bytes, TN cap, vmem_limit). Conservative fallback."""
    try:
        cap = pltpu.get_tpu_info().vmem_capacity_bytes
    except Exception:
        cap = 0
    if cap >= 100 * 1024 * 1024:       # v5e / v6e: 128 MiB physical VMEM
        return 32 * 1024 * 1024, 1024, 64 * 1024 * 1024
    # v7x (64 MiB per TC) or unknown backend: stay conservative.
    return 16 * 1024 * 1024, 512, 32 * 1024 * 1024


@functools.partial(jax.jit, static_argnames=("temperature", "block_rows"))
def distillation_loss(outputs_student, outputs_teacher, temperature=3.0, block_rows=None):
    """Pallas TPU implementation of DistillationLoss.forward.

    outputs_student, outputs_teacher: (N, C) logits (f32/bf16/f16).
    Returns a scalar float32 loss.
    """
    assert outputs_student.shape == outputs_teacher.shape
    assert outputs_student.ndim == 2
    n, c = outputs_student.shape

    itemsize = int(max(outputs_student.dtype.itemsize, outputs_teacher.dtype.itemsize))
    sub = max(8, 32 // itemsize)       # packed sublane tile: 8 for f32, 16 for bf16/f16
    budget_bytes, tn_cap, vmem_limit = _vmem_params()

    if block_rows is None:
        # 2 inputs x 2 pipeline buffers of (TN, C) input dtype + ~4 f32 (TN, C) temporaries.
        per_row_bytes = c * (4 * itemsize + 4 * 4)
        tn = budget_bytes // max(per_row_bytes, 1)
    else:
        tn = int(block_rows)
    tn = max(sub, min(tn_cap, (tn // sub) * sub))
    if n > sub:
        # Keep the grid >= 2 steps so ("parallel",) can shard row tiles across both
        # TensorCores on v7x (no measurable cost on single-TC v5e/v6e).
        tn = min(tn, _round_up(-(-n // 2), sub))
    tn = min(tn, _round_up(n, sub))

    grid_rows = pl.cdiv(n, tn)
    needs_row_mask = (n % tn) != 0

    kernel = _make_kl_kernel(temperature, n, tn, needs_row_mask)

    partials = pl.pallas_call(
        kernel,
        out_shape=jax.ShapeDtypeStruct((grid_rows * tn, 1), jnp.float32),
        grid=(grid_rows,),
        in_specs=[
            # Full class dim per block (== array dim, legal even when c % 128 != 0).
            pl.BlockSpec((tn, c), lambda i: (i, 0)),
            pl.BlockSpec((tn, c), lambda i: (i, 0)),
        ],
        out_specs=pl.BlockSpec((tn, 1), lambda i: (i, 0)),
        compiler_params=pltpu.CompilerParams(
            dimension_semantics=("parallel",),
            vmem_limit_bytes=vmem_limit,
        ),
    )(outputs_student, outputs_teacher)

    # 'batchmean': divide by the global batch size N (masked overhang rows contribute 0).
    return jnp.sum(partials) / jnp.float32(n)


def _reference_loss(student, teacher, temperature=3.0):
    # Pure-JAX reference mirroring torch.nn.KLDivLoss(reduction='batchmean').
    s = student.astype(jnp.float32) / temperature
    t = teacher.astype(jnp.float32)
    log_q = jax.nn.log_softmax(s, axis=1)
    p = jax.nn.softmax(t, axis=1)
    log_p = jax.nn.log_softmax(t, axis=1)
    return jnp.sum(p * (log_p - log_q)) / s.shape[0]


if __name__ == "__main__":
    key = jax.random.PRNGKey(0)
    k1, k2, k3, k4 = jax.random.split(key, 4)

    # Case 1: small logits (batch=8, classes=32) — single tile, class dim not 128-aligned.
    N, C = 8, 32
    student = jax.random.normal(k1, (N, C), dtype=jnp.float32) * 2.0
    teacher = jax.random.normal(k2, (N, C), dtype=jnp.float32) * 2.0
    loss = jax.block_until_ready(distillation_loss(student, teacher, temperature=3.0))
    ref = _reference_loss(student, teacher, temperature=3.0)
    assert jnp.allclose(loss, ref, atol=1e-5, rtol=1e-5), (loss, ref)

    # Case 2: non-aligned N and C with a forced small row tile — exercises the multi-tile
    # grid and the ragged-last-tile row mask (no padding anywhere).
    N2, C2 = 200, 160
    student2 = jax.random.normal(k3, (N2, C2), dtype=jnp.float32) * 1.5
    teacher2 = jax.random.normal(k4, (N2, C2), dtype=jnp.float32) * 1.5
    loss2 = jax.block_until_ready(
        distillation_loss(student2, teacher2, temperature=3.0, block_rows=64)
    )
    ref2 = _reference_loss(student2, teacher2, temperature=3.0)
    assert jnp.allclose(loss2, ref2, atol=1e-5, rtol=1e-5), (loss2, ref2)

    print("KERNEL_OK")
</pallas_src>

<mosaic_0001>
module attributes {stable_mosaic.version = 11 : i64} {
  func.func @kernel(%arg0: i32, %arg1: memref<8x32xf32, #tpu.memory_space<vmem>>, %arg2: memref<8x32xf32, #tpu.memory_space<vmem>>, %arg3: memref<8x1xf32, #tpu.memory_space<vmem>>) attributes {dimension_semantics = [#tpu.dimension_semantics<parallel>], iteration_bounds = array<i64: 1>, scalar_prefetch = 0 : i64, scratch_operands = 0 : i64, tpu.core_type = #tpu.core_type<tc>, window_params = [{transform_indices = @transform_0, window_bounds = array<i64: 8, 32>}, {transform_indices = @transform_1, window_bounds = array<i64: 8, 32>}, {transform_indices = @transform_2, window_bounds = array<i64: 8, 1>}]} {
    %c0 = arith.constant 0 : index
    %c0_0 = arith.constant 0 : index
    %0 = vector.load %arg1[%c0, %c0_0] : memref<8x32xf32, #tpu.memory_space<vmem>>, vector<8x32xf32>
    %cst = arith.constant 0.333333343 : f32
    %1 = vector.broadcast %cst : f32 to vector<8x32xf32>
    %2 = arith.mulf %0, %1 : vector<8x32xf32>
    %c0_1 = arith.constant 0 : index
    %c0_2 = arith.constant 0 : index
    %3 = vector.load %arg2[%c0_1, %c0_2] : memref<8x32xf32, #tpu.memory_space<vmem>>, vector<8x32xf32>
    %cst_3 = arith.constant dense<0xFF800000> : vector<8xf32>
    %4 = vector.multi_reduction <maximumf>, %2, %cst_3 [1] : vector<8x32xf32> to vector<8xf32>
    %5 = vector.shape_cast %4 : vector<8xf32> to vector<8x1xf32>
    %6 = vector.broadcast %5 : vector<8x1xf32> to vector<8x32xf32>
    %7 = arith.subf %2, %6 : vector<8x32xf32>
    %cst_4 = arith.constant dense<0xFF800000> : vector<8xf32>
    %8 = vector.multi_reduction <maximumf>, %3, %cst_4 [1] : vector<8x32xf32> to vector<8xf32>
    %9 = vector.shape_cast %8 : vector<8xf32> to vector<8x1xf32>
    %10 = vector.broadcast %9 : vector<8x1xf32> to vector<8x32xf32>
    %11 = arith.subf %3, %10 : vector<8x32xf32>
    %12 = math.exp %7 : vector<8x32xf32>
    %cst_5 = arith.constant dense<0.000000e+00> : vector<8xf32>
    %13 = vector.multi_reduction <add>, %12, %cst_5 [1] : vector<8x32xf32> to vector<8xf32>
    %14 = vector.shape_cast %13 : vector<8xf32> to vector<8x1xf32>
    %15 = math.exp %11 : vector<8x32xf32>
    %cst_6 = arith.constant dense<0.000000e+00> : vector<8xf32>
    %16 = vector.multi_reduction <add>, %15, %cst_6 [1] : vector<8x32xf32> to vector<8xf32>
    %17 = vector.shape_cast %16 : vector<8xf32> to vector<8x1xf32>
    %18 = arith.subf %11, %7 : vector<8x32xf32>
    %19 = arith.mulf %15, %18 : vector<8x32xf32>
    %cst_7 = arith.constant dense<0.000000e+00> : vector<8xf32>
    %20 = vector.multi_reduction <add>, %19, %cst_7 [1] : vector<8x32xf32> to vector<8xf32>
    %21 = vector.shape_cast %20 : vector<8xf32> to vector<8x1xf32>
    %22 = arith.divf %21, %17 : vector<8x1xf32>
    %23 = math.log %17 : vector<8x1xf32>
    %24 = arith.subf %22, %23 : vector<8x1xf32>
    %25 = math.log %14 : vector<8x1xf32>
    %26 = arith.addf %24, %25 : vector<8x1xf32>
    %c0_8 = arith.constant 0 : index
    %c0_9 = arith.constant 0 : index
    %27 = vector.load %arg3[%c0_8, %c0_9] : memref<8x1xf32, #tpu.memory_space<vmem>>, vector<8x1xf32>
    tpu.vector_store %arg3[%c0_8, %c0_9], %26 {strides = array<i32>} : memref<8x1xf32, #tpu.memory_space<vmem>>, vector<8x1xf32>,
    return
  }
  func.func @transform_0(%arg0: i32) -> (i32, i32) {
    %c0_i32 = arith.constant 0 : i32
    %c0_i32_0 = arith.constant 0 : i32
    return %arg0, %c0_i32 : i32, i32
  }
  func.func @transform_1(%arg0: i32) -> (i32, i32) {
    %c0_i32 = arith.constant 0 : i32
    %c0_i32_0 = arith.constant 0 : i32
    return %arg0, %c0_i32 : i32, i32
  }
  func.func @transform_2(%arg0: i32) -> (i32, i32) {
    %c0_i32 = arith.constant 0 : i32
    %c0_i32_0 = arith.constant 0 : i32
    return %arg0, %c0_i32 : i32, i32
  }
}

</mosaic_0001>

<bundles_post_ra>
// kernel: distillation_loss.1
= control target key start
LH: loop header
LB: loop body
LE: loop exit
PB: predicated region body
PF: predicated region fallthrough
CT: control target
= control target key end

     0   :  { %7 = vsyncpa [#allocation3], 0  ;;  %s187_s0 = inlined_call_operand.hbm [shape: f32[8,32], index: 0, kind: input, shape index: {}]   ;;  %s188_s1 = inlined_call_operand.hbm [shape: f32[8,32], index: 1, kind: input, shape index: {}]   ;;  %s189_s2 = inlined_call_operand.vmem [shape: f32[8,1], index: 2, kind: output, shape index: {}]  }
   0x1   :  { %8 = vsyncpa [#allocation5], 0  ;;  %s138_s9 = smov [#allocation2]   ;;  %s139_s11 = smov [#allocation4]  }
   0x2   :  { %s15_s10 = sshll.u32 %s138_s9, 4  ;;  %s25_s12 = sshll.u32 %s139_s11, 4  ;;  %s16_s10 = int_to_ptr.vmem [resolvable:$true] %s15_s10  ;;  %s26_s12 = int_to_ptr.vmem [resolvable:$true] %s25_s12 }
   0x3   :  { %s90_s15 = scalar_lea.hbm %s187_s0, 128 }
   0x4   :  { %p91_p0 = scmp.ne.s32.totalorder %s187_s0, %s90_s15  ;;  %p94_p1 = scmp.lt.u32.totalorder %s90_s15, %s187_s0 }
   0x6   :  { %p96_p2 = pnand %p94_p1, %p91_p0 }
   0x8   :  { %99 = shalt.err (!%p96_p2)
}
   0x9   :  { %s100_s20 = scalar_lea.vmem %s16_s10, 128  ;;  %p105_p4 = scmp.lt.s32.totalorder %s16_s10, %s16_s10 }
   0xa   :  { %p101_p3 = scmp.ne.s32.totalorder %s16_s10, %s100_s20  ;;  %p106_p5 = scmp.lt.s32.totalorder %s100_s20, %s100_s20 }
   0xc   :  { %p107_p6 = por %p106_p5, %p105_p4 }
   0xe   :  { %p108_p7 = pnand %p107_p6, %p101_p3 }
  0x10   :  { %111 = shalt.err (!%p108_p7)
}
  0x11   :  { %18 = dma.hbm_to_vmem [thread:$0]  %s187_s0, 128, %s16_s10, [#allocation3]  }
  0x12   :  { %s112_s25 = scalar_lea.hbm %s188_s1, 128 }
  0x13   :  { %p113_p8 = scmp.ne.s32.totalorder %s188_s1, %s112_s25  ;;  %p116_p9 = scmp.lt.u32.totalorder %s112_s25, %s188_s1 }
  0x15   :  { %p118_p10 = pnand %p116_p9, %p113_p8 }
  0x17   :  { %121 = shalt.err (!%p118_p10)
}
  0x18   :  { %s122_s30 = scalar_lea.vmem %s26_s12, 128  ;;  %p127_p12 = scmp.lt.s32.totalorder %s26_s12, %s26_s12 }
  0x19   :  { %p123_p11 = scmp.ne.s32.totalorder %s26_s12, %s122_s30  ;;  %p128_p13 = scmp.lt.s32.totalorder %s122_s30, %s122_s30 }
  0x1b   :  { %p129_p0 = por %p128_p13, %p127_p12 }
  0x1d   :  { %p130_p1 = pnand %p129_p0, %p123_p11 }
  0x1f   :  { %133 = shalt.err (!%p130_p1)
}
  0x20   :  { %28 = dma.hbm_to_vmem [thread:$0]  %s188_s1, 128, %s26_s12, [#allocation5]  }
  0x21   :  { %134 = dma.done.wait [#allocation3], 128  }
  0x22   :  { %135 = vsyncadd [#allocation3], 4294967168 }
  0x23   :  { %136 = dma.done.wait [#allocation5], 128  }
  0x24   :  { %137 = vsyncadd [#allocation5], 4294967168  ;;  %vm38_vm0 = vcmask 261120   ;;  %v37_v0 = vld [vmem:[#allocation4] sm:$0xff]  ;;  %v35_v1 = vld [vmem:[#allocation2] sm:$0xff]  ;;  %vm70_vm1 = vcmask 7168  }
  0x25   :  { %v43_v2 = vsel %vm38_vm0, %v37_v0, -inf  ;;  %v36_v3 = vmul.f32 0.33333334, %v35_v1 }
  0x26   :  { %44 = vmax.xlane.f32.xlu0 %v43_v2 }
  0x27   :  { %v39_v4 = vsel %vm38_vm0, %v36_v3, -inf }
  0x2a   :  { %40 = vmax.xlane.f32.xlu0 %v39_v4 }
  0xb3   :  { %v45_v5 = vpop.xlane.xlu0 %44 }
  0xb4   :  { %v46_v6 = vsub.f32 %v37_v0, %v45_v5 }
  0xb6   :  { %v52_v7 = vmul.f32 1.442695, %v46_v6 }
  0xb7   :  { %v41_v8 = vpop.xlane.xlu0 %40 }
  0xb8   :  { %80 = vpow2.f32 %v52_v7  ;;  %v42_v9 = vsub.f32 %v36_v3, %v41_v8 }
  0xba   :  { %v47_v10 = vmul.f32 1.442695, %v42_v9  ;;  %v57_v11 = vsub.f32 %v46_v6, %v42_v9 }
  0xbc   :  { %82 = vpow2.f32 %v47_v10 }
  0xc2   :  { %v81_v12 = vpop.eup %80 }
  0xc3   :  { %v54_v13 = vsel %vm38_vm0, %v81_v12, 0.0  ;;  %v58_v14 = vmul.f32 %v81_v12, %v57_v11 }
  0xc4   :  { %55 = vadd.xlane.f32.xlu1 %v54_v13 }
  0xc5   :  { %v59_v15 = vsel %vm38_vm0, %v58_v14, 0.0 }
  0xc6   :  { %v83_v16 = vpop.eup %82  ;;  %60 = vadd.xlane.f32.xlu0 %v59_v15 }
  0xc7   :  { %v49_v17 = vsel %vm38_vm0, %v83_v16, 0.0 }
  0xc8   :  { %50 = vadd.xlane.f32.xlu1 %v49_v17 }
 0x151   :  { %v56_v18 = vpop.xlane.xlu1 %55 }
 0x152   :  { %84 = vrcp.f32 %v56_v18 }
 0x153   :  { %86 = vlog2.f32 %v56_v18  ;;  %v61_v21 = vpop.xlane.xlu0 %60 }
 0x155   :  { %v51_v19 = vpop.xlane.xlu1 %50 }
 0x156   :  { %88 = vlog2.f32 %v51_v19 }
 0x15c   :  { %v85_v20 = vpop.eup %84 }
 0x15d   :  { %v87_v22 = vpop.eup %86  ;;  %v63_v23 = vmul.f32 %v85_v20, %v61_v21 }
 0x15e   :  { %v65_v24 = vmul.f32 0.6931472, %v87_v22 }
 0x160   :  { %v89_v25 = vpop.eup %88  ;;  %v66_v26 = vsub.f32 %v63_v23, %v65_v24 }
 0x161   :  { %v68_v27 = vmul.f32 0.6931472, %v89_v25 }
 0x163   :  { %v69_v28 = vadd.f32 %v68_v27, %v66_v26 }
 0x165   :  { %71 = vst.msk [vmem:[%s189_s2] sm:$0xff] %vm70_vm1, %v69_v28 }
 0x166   :  { %76 = vsyncpa [#allocation3], 1 }
 0x167   :  { %77 = vsyncpa [#allocation5], 1 }

</bundles_post_ra>
